<compile_context>
chip_gen: v7x
topology: tpu7x:2x2x1
jax: 0.10.0
libtpu: 0.0.40
codegen_flags: <defaults>
</compile_context>

<pallas_src>
import jax
import jax.numpy as jnp
from jax.experimental import pallas as pl
from jax.experimental.pallas import tpu as pltpu

_LANE = 128
_SUBLANE = 8
_NEG = -1e30  # finite "minus infinity" for padded class lanes (exp underflows to 0)


def _round_up(x, m):
    return ((x + m - 1) // m) * m


def _sublane_multiple(dtype):
    # native sublane tiling: 8 rows for 4-byte, 16 for 2-byte, 32 for 1-byte
    return max(_SUBLANE, 32 // jnp.dtype(dtype).itemsize)


def _vmem_capacity_bytes():
    try:
        return int(pltpu.get_tpu_info().vmem_capacity_bytes)
    except Exception:
        return 64 * 1024 * 1024  # v7x per-TC size == safe lower bound for all gens


def loglinear_kernel(x_ref, w_ref, b_ref, o_ref):
    # x_ref: [TB, IN_pad]       pipelined over the batch grid axis
    # w_ref: [IN_pad, OUT_pad]  VMEM-resident, pre-transposed (classes on lanes)
    # b_ref: [1, OUT_pad]       VMEM-resident, padded lanes = -1e30
    x = x_ref[...]                      # native dtype: bf16 feeds the MXU at bf16 rate
    w = w_ref[...]
    b = b_ref[...].astype(jnp.float32)

    # MXU matmul with f32 accumulation; no transpose in the hot loop.
    logits = jnp.dot(x, w, preferred_element_type=jnp.float32) + b   # [TB, OUT_pad] f32

    # Numerically stable log_softmax over the lane (class) axis, all in f32.
    m = jnp.max(logits, axis=-1, keepdims=True)
    shifted = logits - m
    lse = jnp.log(jnp.sum(jnp.exp(shifted), axis=-1, keepdims=True))
    o_ref[...] = (shifted - lse).astype(o_ref.dtype)


def prepare_loglinear_params(weight, bias, compute_dtype):
    """One-time-per-weight layout work (hoist/cache this across calls):
    transpose nn.Linear's [OUT, IN] to [IN_pad, OUT_pad] in the activation
    dtype, zero-pad to lane multiples, poison padded bias class lanes."""
    OUT, IN = weight.shape
    IN_pad = _round_up(IN, _LANE)
    OUT_pad = _round_up(OUT, _LANE)

    w_t = weight.T.astype(compute_dtype)                       # [IN, OUT]
    if (IN_pad, OUT_pad) != (IN, OUT):
        w_t = jnp.pad(w_t, ((0, IN_pad - IN), (0, OUT_pad - OUT)))

    b_p = bias.astype(jnp.float32)
    if OUT_pad != OUT:
        b_p = jnp.pad(b_p, (0, OUT_pad - OUT), constant_values=_NEG)
    return w_t.reshape(IN_pad, OUT_pad), b_p.reshape(1, OUT_pad)


def loglinear_classifier(x, weight, bias, *, max_batch_tile=1024, prepared=None):
    """log_softmax(x @ weight.T + bias, axis=-1).

    x: [B, IN]; weight: [OUT, IN] (PyTorch nn.Linear layout); bias: [OUT].
    Returns [B, OUT] log-probs in x.dtype. Pass `prepared=prepare_loglinear_params(...)`
    to reuse the transposed/padded weight across many calls.
    """
    B, IN = x.shape
    OUT, IN_w = weight.shape
    assert IN_w == IN, "weight must be [OUT, IN]"

    compute_dtype = x.dtype  # keep w.dtype == x.dtype -> no silent f32 promotion
    if prepared is None:
        w_t, b_p = prepare_loglinear_params(weight, bias, compute_dtype)
    else:
        w_t, b_p = prepared
    IN_pad, OUT_pad = w_t.shape

    cd_bytes = jnp.dtype(compute_dtype).itemsize
    out_bytes = jnp.dtype(x.dtype).itemsize
    sl = _sublane_multiple(x.dtype)

    # Pad batch only to the sublane multiple (not to a tb multiple).
    B_pad = _round_up(B, sl)

    def vmem_estimate(t, w_bufs):
        return (2 * t * IN_pad * cd_bytes          # double-buffered x blocks
                + 2 * t * OUT_pad * out_bytes      # double-buffered out blocks
                + w_bufs * IN_pad * OUT_pad * cd_bytes   # resident weight buffers
                + w_bufs * OUT_pad * 4                   # resident bias buffers
                + 3 * t * OUT_pad * 4)             # in-kernel f32 logits/shifted/exp temps

    vmem_cap = _vmem_capacity_bytes()
    vmem_budget = int(vmem_cap * 0.82)  # ~52 MiB on v7x, ~105 MiB on v5e/v6e

    tb = min(_round_up(min(max_batch_tile, B_pad), sl), B_pad)
    tb_floor = _round_up(min(256, B_pad), sl)      # MXU M-dim floor (keep the MXU full)
    # Conservative accounting: 2x weight (covers the default double-buffer fallback).
    while tb > tb_floor and vmem_estimate(tb, 2) > vmem_budget:
        tb = max(tb_floor, _round_up(tb // 2, sl))
    # TODO(synk): if the resident weight alone ever exceeds the budget, K-tile the
    # weight with an online logsumexp instead of shrinking tb below the MXU M dim.
    assert vmem_estimate(tb, 2) <= vmem_budget, (
        "weight too large for the resident-weight kernel; needs a K-tiled variant")

    # Skip the extra HBM pass over x when it is already aligned.
    if B_pad != B or IN_pad != IN:
        x_p = jnp.pad(x, ((0, B_pad - B), (0, IN_pad - IN)))
    else:
        x_p = x

    n_blocks = pl.cdiv(B_pad, tb)
    vmem_limit = min(int(vmem_cap * 0.85),
                     max(32 * 1024 * 1024, vmem_estimate(tb, 2) + (2 << 20)))

    def run(single_buffer_weight):
        if single_buffer_weight:
            # Resident operands: one buffer is enough (constant block index).
            w_spec = pl.BlockSpec((IN_pad, OUT_pad), lambda i: (0, 0),
                                  pipeline_mode=pl.Buffered(1))
            b_spec = pl.BlockSpec((1, OUT_pad), lambda i: (0, 0),
                                  pipeline_mode=pl.Buffered(1))
        else:
            w_spec = pl.BlockSpec((IN_pad, OUT_pad), lambda i: (0, 0))
            b_spec = pl.BlockSpec((1, OUT_pad), lambda i: (0, 0))

        return pl.pallas_call(
            loglinear_kernel,
            out_shape=jax.ShapeDtypeStruct((B_pad, OUT_pad), x.dtype),
            grid_spec=pltpu.PrefetchScalarGridSpec(
                num_scalar_prefetch=0,
                grid=(n_blocks,),
                in_specs=[
                    pl.BlockSpec((tb, IN_pad), lambda i: (i, 0)),  # pipelined activations
                    w_spec,                                        # resident weight
                    b_spec,                                        # resident bias
                ],
                out_specs=pl.BlockSpec((tb, OUT_pad), lambda i: (i, 0)),  # lane-dense stores
            ),
            compiler_params=pltpu.CompilerParams(
                dimension_semantics=("parallel",),  # independent batch tiles -> megacore
                vmem_limit_bytes=vmem_limit,
            ),
        )(x_p, w_t, b_p)

    try:
        out = run(True)
    except Exception:
        # pipeline_mode=pl.Buffered(1) unsupported in this jax build; the VMEM
        # estimate already accounts for the default double-buffered weight.
        out = run(False)

    return out[:B, :OUT]


def reference(x, weight, bias):
    logits = x @ weight.T + bias
    return jax.nn.log_softmax(logits, axis=-1)


if __name__ == "__main__":
    key = jax.random.PRNGKey(0)
    k_x, k_w, k_b = jax.random.split(key, 3)

    B, IN, OUT = 8, 32, 16  # small shapes consistent with nn.Linear(input_size, output_size)

    x = jax.random.normal(k_x, (B, IN), dtype=jnp.float32)
    # Deterministic init mimicking nn.Linear's uniform(-1/sqrt(IN), 1/sqrt(IN))
    bound = 1.0 / (IN ** 0.5)
    weight = jax.random.uniform(k_w, (OUT, IN), minval=-bound, maxval=bound, dtype=jnp.float32)
    bias = jax.random.uniform(k_b, (OUT,), minval=-bound, maxval=bound, dtype=jnp.float32)

    ref = reference(x, weight, bias)

    # f32 path: exact check against the pure-JAX reference.
    out = loglinear_classifier(x, weight, bias)
    jax.block_until_ready(out)
    assert out.shape == (B, OUT)
    assert jnp.allclose(out, ref, atol=1e-5, rtol=1e-5), "f32 mismatch vs reference"

    # bf16 activation path: weight cast to match (bf16 MXU operands, f32 accumulation).
    out_bf16 = loglinear_classifier(x.astype(jnp.bfloat16), weight, bias)
    jax.block_until_ready(out_bf16)
    assert out_bf16.shape == (B, OUT) and out_bf16.dtype == jnp.bfloat16
    assert jnp.allclose(out_bf16.astype(jnp.float32), ref, atol=1e-1, rtol=1e-1), \
        "bf16 mismatch vs reference"

    print("KERNEL_OK")
</pallas_src>

<mosaic_0001>
module attributes {stable_mosaic.version = 11 : i64} {
  func.func @loglinear_kernel(%arg0: i32, %arg1: memref<8x128xf32, #tpu.memory_space<vmem>>, %arg2: memref<128x128xf32, #tpu.memory_space<vmem>>, %arg3: memref<1x128xf32, #tpu.memory_space<vmem>>, %arg4: memref<8x128xf32, #tpu.memory_space<vmem>>) attributes {dimension_semantics = [#tpu.dimension_semantics<parallel>], iteration_bounds = array<i64: 1>, scalar_prefetch = 0 : i64, scratch_operands = 0 : i64, tpu.core_type = #tpu.core_type<tc>, window_params = [{transform_indices = @transform_0, window_bounds = array<i64: 8, 128>}, {pipeline_mode = #tpu.pipeline_mode<synchronous>, transform_indices = @transform_1, window_bounds = array<i64: 128, 128>}, {pipeline_mode = #tpu.pipeline_mode<synchronous>, transform_indices = @transform_2, window_bounds = array<i64: 1, 128>}, {transform_indices = @transform_3, window_bounds = array<i64: 8, 128>}]} {
    %c0 = arith.constant 0 : index
    %c0_0 = arith.constant 0 : index
    %0 = vector.load %arg1[%c0, %c0_0] : memref<8x128xf32, #tpu.memory_space<vmem>>, vector<8x128xf32>
    %c0_1 = arith.constant 0 : index
    %c0_2 = arith.constant 0 : index
    %1 = vector.load %arg2[%c0_1, %c0_2] : memref<128x128xf32, #tpu.memory_space<vmem>>, vector<128x128xf32>
    %c0_3 = arith.constant 0 : index
    %c0_4 = arith.constant 0 : index
    %2 = vector.load %arg3[%c0_3, %c0_4] : memref<1x128xf32, #tpu.memory_space<vmem>>, vector<1x128xf32>
    %cst = arith.constant dense<0.000000e+00> : vector<8x128xf32>
    %3 = tpu.matmul %0, %1, %cst {dimension_numbers = #tpu.dot_dimension_numbers<[1], [0], [0], [1], [0, 0, 1, 1], [], []>} : vector<8x128xf32>, vector<128x128xf32>, vector<8x128xf32> -> vector<8x128xf32>
    %4 = vector.broadcast %2 : vector<1x128xf32> to vector<8x128xf32>
    %5 = arith.addf %3, %4 : vector<8x128xf32>
    %cst_5 = arith.constant dense<0xFF800000> : vector<8xf32>
    %6 = vector.multi_reduction <maximumf>, %5, %cst_5 [1] : vector<8x128xf32> to vector<8xf32>
    %7 = vector.shape_cast %6 : vector<8xf32> to vector<8x1xf32>
    %8 = vector.broadcast %7 : vector<8x1xf32> to vector<8x128xf32>
    %9 = arith.subf %5, %8 : vector<8x128xf32>
    %10 = math.exp %9 : vector<8x128xf32>
    %cst_6 = arith.constant dense<0.000000e+00> : vector<8xf32>
    %11 = vector.multi_reduction <add>, %10, %cst_6 [1] : vector<8x128xf32> to vector<8xf32>
    %12 = vector.shape_cast %11 : vector<8xf32> to vector<8x1xf32>
    %13 = math.log %12 : vector<8x1xf32>
    %14 = vector.broadcast %13 : vector<8x1xf32> to vector<8x128xf32>
    %15 = arith.subf %9, %14 : vector<8x128xf32>
    %c0_7 = arith.constant 0 : index
    %c0_8 = arith.constant 0 : index
    %16 = vector.load %arg4[%c0_7, %c0_8] : memref<8x128xf32, #tpu.memory_space<vmem>>, vector<8x128xf32>
    tpu.vector_store %arg4[%c0_7, %c0_8], %15 {strides = array<i32>} : memref<8x128xf32, #tpu.memory_space<vmem>>, vector<8x128xf32>,
    return
  }
  func.func @transform_0(%arg0: i32) -> (i32, i32) {
    %c0_i32 = arith.constant 0 : i32
    %c0_i32_0 = arith.constant 0 : i32
    return %arg0, %c0_i32 : i32, i32
  }
  func.func @transform_1(%arg0: i32) -> (i32, i32) {
    %c0_i32 = arith.constant 0 : i32
    %c0_i32_0 = arith.constant 0 : i32
    %c0_i32_1 = arith.constant 0 : i32
    return %c0_i32, %c0_i32_0 : i32, i32
  }
  func.func @transform_2(%arg0: i32) -> (i32, i32) {
    %c0_i32 = arith.constant 0 : i32
    %c0_i32_0 = arith.constant 0 : i32
    %c0_i32_1 = arith.constant 0 : i32
    return %c0_i32, %c0_i32_0 : i32, i32
  }
  func.func @transform_3(%arg0: i32) -> (i32, i32) {
    %c0_i32 = arith.constant 0 : i32
    %c0_i32_0 = arith.constant 0 : i32
    return %arg0, %c0_i32 : i32, i32
  }
}

module attributes {stable_mosaic.version = 11 : i64} {
  func.func @loglinear_kernel(%arg0: i32, %arg1: memref<8x128xf32, #tpu.memory_space<vmem>>, %arg2: memref<128x128xf32, #tpu.memory_space<vmem>>, %arg3: memref<1x128xf32, #tpu.memory_space<vmem>>, %arg4: memref<8x128xf32, #tpu.memory_space<vmem>>) attributes {dimension_semantics = [#tpu.dimension_semantics<parallel>], iteration_bounds = array<i64: 1>, scalar_prefetch = 0 : i64, scratch_operands = 0 : i64, tpu.core_type = #tpu.core_type<tc>, window_params = [{transform_indices = @transform_0, window_bounds = array<i64: 8, 128>}, {pipeline_mode = #tpu.pipeline_mode<synchronous>, transform_indices = @transform_1, window_bounds = array<i64: 128, 128>}, {pipeline_mode = #tpu.pipeline_mode<synchronous>, transform_indices = @transform_2, window_bounds = array<i64: 1, 128>}, {transform_indices = @transform_3, window_bounds = array<i64: 8, 128>}]} {
    %c0 = arith.constant 0 : index
    %c0_0 = arith.constant 0 : index
    %0 = vector.load %arg1[%c0, %c0_0] : memref<8x128xf32, #tpu.memory_space<vmem>>, vector<8x128xf32>
    %c0_1 = arith.constant 0 : index
    %c0_2 = arith.constant 0 : index
    %1 = vector.load %arg2[%c0_1, %c0_2] : memref<128x128xf32, #tpu.memory_space<vmem>>, vector<128x128xf32>
    %c0_3 = arith.constant 0 : index
    %c0_4 = arith.constant 0 : index
    %2 = vector.load %arg3[%c0_3, %c0_4] : memref<1x128xf32, #tpu.memory_space<vmem>>, vector<1x128xf32>
    %cst = arith.constant dense<0.000000e+00> : vector<8x128xf32>
    %3 = tpu.matmul %0, %1, %cst {dimension_numbers = #tpu.dot_dimension_numbers<[1], [0], [0], [1], [0, 0, 1, 1], [], []>} : vector<8x128xf32>, vector<128x128xf32>, vector<8x128xf32> -> vector<8x128xf32>
    %4 = vector.broadcast %2 : vector<1x128xf32> to vector<8x128xf32>
    %5 = arith.addf %3, %4 : vector<8x128xf32>
    %cst_5 = arith.constant dense<0xFF800000> : vector<8xf32>
    %6 = vector.multi_reduction <maximumf>, %5, %cst_5 [1] : vector<8x128xf32> to vector<8xf32>
    %7 = vector.shape_cast %6 : vector<8xf32> to vector<8x1xf32>
    %8 = vector.broadcast %7 : vector<8x1xf32> to vector<8x128xf32>
    %9 = arith.subf %5, %8 : vector<8x128xf32>
    %10 = math.exp %9 : vector<8x128xf32>
    %cst_6 = arith.constant dense<0.000000e+00> : vector<8xf32>
    %11 = vector.multi_reduction <add>, %10, %cst_6 [1] : vector<8x128xf32> to vector<8xf32>
    %12 = vector.shape_cast %11 : vector<8xf32> to vector<8x1xf32>
    %13 = math.log %12 : vector<8x1xf32>
    %14 = vector.broadcast %13 : vector<8x1xf32> to vector<8x128xf32>
    %15 = arith.subf %9, %14 : vector<8x128xf32>
    %c0_7 = arith.constant 0 : index
    %c0_8 = arith.constant 0 : index
    %16 = vector.load %arg4[%c0_7, %c0_8] : memref<8x128xf32, #tpu.memory_space<vmem>>, vector<8x128xf32>
    tpu.vector_store %arg4[%c0_7, %c0_8], %15 {strides = array<i32>} : memref<8x128xf32, #tpu.memory_space<vmem>>, vector<8x128xf32>,
    return
  }
  func.func @transform_0(%arg0: i32) -> (i32, i32) {
    %c0_i32 = arith.constant 0 : i32
    %c0_i32_0 = arith.constant 0 : i32
    return %arg0, %c0_i32 : i32, i32
  }
  func.func @transform_1(%arg0: i32) -> (i32, i32) {
    %c0_i32 = arith.constant 0 : i32
    %c0_i32_0 = arith.constant 0 : i32
    %c0_i32_1 = arith.constant 0 : i32
    return %c0_i32, %c0_i32_0 : i32, i32
  }
  func.func @transform_2(%arg0: i32) -> (i32, i32) {
    %c0_i32 = arith.constant 0 : i32
    %c0_i32_0 = arith.constant 0 : i32
    %c0_i32_1 = arith.constant 0 : i32
    return %c0_i32, %c0_i32_0 : i32, i32
  }
  func.func @transform_3(%arg0: i32) -> (i32, i32) {
    %c0_i32 = arith.constant 0 : i32
    %c0_i32_0 = arith.constant 0 : i32
    return %arg0, %c0_i32 : i32, i32
  }
}

</mosaic_0001>

<bundles_post_ra>
// kernel: tpu_custom_call.1
= control target key start
LH: loop header
LB: loop body
LE: loop exit
PB: predicated region body
PF: predicated region fallthrough
CT: control target
= control target key end

     0   :  { %8 = vsyncpa [#allocation3], 0  ;;  %s397_s0 = inlined_call_operand.hbm [shape: f32[8,128], index: 0, kind: input, shape index: {}]   ;;  %s398_s1 = inlined_call_operand.hbm [shape: f32[128,128], index: 1, kind: input, shape index: {}]   ;;  %s399_s2 = inlined_call_operand.vmem [shape: f32[1,128], index: 2, kind: input, shape index: {}]   ;;  %s400_s3 = inlined_call_operand.hbm [shape: f32[8,128], index: 3, kind: output, shape index: {}]  }
   0x1   :  { %9 = vsyncpa [#allocation6], 0 }
   0x2   :  { %10 = vsyncpa [#allocation4], 0  ;;  %s323_s12 = smov [#allocation2]   ;;  %s324_s14 = smov [#allocation5]  }
   0x3   :  { %s17_s13 = sshll.u32 %s323_s12, 4  ;;  %s26_s15 = sshll.u32 %s324_s14, 4  ;;  %s18_s13 = int_to_ptr.vmem [resolvable:$true] %s17_s13  ;;  %s351_s15 = int_to_ptr.vmem [resolvable:$true] %s26_s15 }
   0x4   :  { %s251_s18 = scalar_lea.hbm %s397_s0, 128 }
   0x5   :  { %p252_p0 = scmp.ne.s32.totalorder %s397_s0, %s251_s18  ;;  %p255_p1 = scmp.lt.u32.totalorder %s251_s18, %s397_s0 }
   0x7   :  { %p257_p2 = pnand %p255_p1, %p252_p0 }
   0x9   :  { %260 = shalt.err (!%p257_p2)
}
   0xa   :  { %s261_s23 = scalar_lea.vmem %s18_s13, 128  ;;  %p266_p4 = scmp.lt.s32.totalorder %s18_s13, %s18_s13 }
   0xb   :  { %p262_p3 = scmp.ne.s32.totalorder %s18_s13, %s261_s23  ;;  %p267_p5 = scmp.lt.s32.totalorder %s261_s23, %s261_s23 }
   0xd   :  { %p268_p6 = por %p267_p5, %p266_p4 }
   0xf   :  { %p269_p7 = pnand %p268_p6, %p262_p3 }
  0x11   :  { %272 = shalt.err (!%p269_p7)
}
  0x12   :  { %20 = dma.hbm_to_vmem [thread:$0]  %s397_s0, 128, %s18_s13, [#allocation3]  }
  0x13   :  { %s273_s28 = scalar_lea.hbm %s398_s1, 2048 }
  0x14   :  { %p274_p8 = scmp.ne.s32.totalorder %s398_s1, %s273_s28  ;;  %p277_p9 = scmp.lt.u32.totalorder %s273_s28, %s398_s1 }
  0x16   :  { %p279_p10 = pnand %p277_p9, %p274_p8 }
  0x18   :  { %282 = shalt.err (!%p279_p10)
}
  0x19   :  { %s283_s6 = scalar_lea.vmem %s351_s15, 2048  ;;  %p288_p12 = scmp.lt.s32.totalorder %s351_s15, %s351_s15 }
  0x1a   :  { %p284_p11 = scmp.ne.s32.totalorder %s351_s15, %s283_s6  ;;  %p289_p13 = scmp.lt.s32.totalorder %s283_s6, %s283_s6 }
  0x1c   :  { %p290_p0 = por %p289_p13, %p288_p12 }
  0x1e   :  { %p291_p1 = pnand %p290_p0, %p284_p11 }
  0x20   :  { %294 = shalt.err (!%p291_p1)
}
  0x21   :  { %s325_s0 = smov 128   ;;  %s326_s7 = smov 8  }
  0x22   :  { %32 = dma.hbm_to_vmem [thread:$0]  %s398_s1, 2048, %s351_s15, [#allocation6], %s325_s0, %s325_s0, %s326_s7  }
  0x23   :  { %317 = dma.done.wait [#allocation3], 128  }
  0x24   :  { %318 = vsyncadd [#allocation3], 4294967168 }
  0x25   :  { %319 = dma.done.wait [#allocation6], 2048  }
  0x26   :  { %320 = vsyncadd [#allocation6], 4294965248  ;;  %v327_v0 = vmov 0.0|0.0   ;;  %vm328_vm0 = vmmov 0   ;;  %v329_v1 = vmov 0.0   ;;  %v42_v2 = vld [vmem:[#allocation5] sm:$0xff] }
  0x27   :  { %215 = vmatprep.subr.bf16.mxu0 %v327_v0  ;;  %212 = vmatprep.mubr.msk.f32.mxu0 %vm328_vm0, %v329_v1  ;;  %v43_v3 = vld [vmem:[#allocation5 + $0x8] sm:$0xff]  ;;  %v44_v4 = vld [vmem:[#allocation5 + $0x10] sm:$0xff]  ;;  %v45_v6 = vld [vmem:[#allocation5 + $0x18] sm:$0xff]  ;;  %s330_s11 = smov [#allocation7]  }
  0x28   :  { %v216_v5 = vpack.c.bf16 %v43_v3, %v42_v2  ;;  %v219_v7 = vpack.c.bf16 %v45_v6, %v44_v4  ;;  %v46_v8 = vld [vmem:[#allocation5 + $0x20] sm:$0xff]  ;;  %v47_v9 = vld [vmem:[#allocation5 + $0x28] sm:$0xff]  ;;  %v48_v11 = vld [vmem:[#allocation5 + $0x30] sm:$0xff]  ;;  %s152_s12 = sshll.u32 %s330_s11, 4  ;;  %s153_s12 = int_to_ptr.vmem [resolvable:$true] %s152_s12 }
  0x29   :  { %v222_v10 = vpack.c.bf16 %v47_v9, %v46_v8  ;;  %v49_v12 = vld [vmem:[#allocation5 + $0x38] sm:$0xff]  ;;  %v50_v14 = vld [vmem:[#allocation5 + $0x40] sm:$0xff]  ;;  %v51_v15 = vld [vmem:[#allocation5 + $0x48] sm:$0xff]  ;;  %p300_p3 = scmp.lt.s32.totalorder %s153_s12, %s153_s12 }
  0x2a   :  { %217 = vmatpush3.bf16.msra.mxu0 %v216_v5  ;;  %v225_v13 = vpack.c.bf16 %v49_v12, %v48_v11  ;;  %v228_v16 = vpack.c.bf16 %v51_v15, %v50_v14  ;;  %v52_v17 = vld [vmem:[#allocation5 + $0x50] sm:$0xff]  ;;  %v53_v18 = vld [vmem:[#allocation5 + $0x58] sm:$0xff]  ;;  %v54_v20 = vld [vmem:[#allocation5 + $0x60] sm:$0xff] }
  0x2b   :  { %218 = vmatprep.subr.bf16.mxu0 %v327_v0  ;;  %v231_v19 = vpack.c.bf16 %v53_v18, %v52_v17  ;;  %v55_v21 = vld [vmem:[#allocation5 + $0x68] sm:$0xff]  ;;  %v56_v23 = vld [vmem:[#allocation5 + $0x70] sm:$0xff]  ;;  %v57_v24 = vld [vmem:[#allocation5 + $0x78] sm:$0xff] }
  0x2c   :  { %v234_v22 = vpack.c.bf16 %v55_v21, %v54_v20  ;;  %v237_v25 = vpack.c.bf16 %v57_v24, %v56_v23  ;;  %v41_v26 = vld [vmem:[#allocation2] sm:$0xff] }
  0x2d   :  { %v162_v27 = vld [vmem:[%s399_s2] ss:$0 sm:$0xff]  ;;  %s295_s2 = scalar_lea.vmem %s153_s12, 128 }
  0x2e   :  { %220 = vmatpush3.bf16.msra.mxu0 %v219_v7  ;;  %p296_p2 = scmp.ne.s32.totalorder %s153_s12, %s295_s2  ;;  %p301_p4 = scmp.lt.s32.totalorder %s295_s2, %s295_s2 }
  0x2f   :  { %221 = vmatprep.subr.bf16.mxu0 %v327_v0 }
  0x30   :  { %p302_p5 = por %p301_p4, %p300_p3 }
  0x32   :  { %223 = vmatpush3.bf16.msra.mxu0 %v222_v10  ;;  %p303_p6 = pnand %p302_p5, %p296_p2 }
  0x33   :  { %224 = vmatprep.subr.bf16.mxu0 %v327_v0 }
  0x36   :  { %226 = vmatpush3.bf16.msra.mxu0 %v225_v13 }
  0x37   :  { %227 = vmatprep.subr.bf16.mxu0 %v327_v0 }
  0x3a   :  { %229 = vmatpush3.bf16.msra.mxu0 %v228_v16 }
  0x3b   :  { %230 = vmatprep.subr.bf16.mxu0 %v327_v0 }
  0x3e   :  { %232 = vmatpush3.bf16.msra.mxu0 %v231_v19 }
  0x3f   :  { %233 = vmatprep.subr.bf16.mxu0 %v327_v0 }
  0x42   :  { %235 = vmatpush3.bf16.msra.mxu0 %v234_v22 }
  0x43   :  { %236 = vmatprep.subr.bf16.mxu0 %v327_v0 }
  0x46   :  { %238 = vmatpush3.bf16.msra.mxu0 %v237_v25 }
  0x49   :  { %213 = vmatmul.mubr.f32.vlgmr.msra.gmra.mrb[0].mxu0 %v41_v26 }
 0x11c   :  { %v131_v28 = vpop.f32.mrb[0].mxu0 }
 0x11d   :  { %v132_v29 = vadd.f32 %v162_v27, %v131_v28  ;;  %v214_v30 = vpop.f32.mrb[1].mxu0 }
 0x11f   :  { %135 = vmax.xlane.f32.xlu0 %v132_v29 }
 0x1ac   :  { %v136_v31 = vpop.xlane.xlu0 %135 }
 0x1ad   :  { %v137_v32 = vsub.f32 %v132_v29, %v136_v31 }
 0x1af   :  { %v138_v33 = vmul.f32 1.442695, %v137_v32 }
 0x1b1   :  { %247 = vpow2.f32 %v138_v33 }
 0x1bb   :  { %v248_v34 = vpop.eup %247 }
 0x1bc   :  { %140 = vadd.xlane.f32.xlu0 %v248_v34 }
 0x249   :  { %v141_v35 = vpop.xlane.xlu0 %140 }
 0x24a   :  { %249 = vlog2.f32 %v141_v35 }
 0x254   :  { %v250_v36 = vpop.eup %249 }
 0x255   :  { %v143_v37 = vmul.f32 0.6931472, %v250_v36 }
 0x257   :  { %v144_v38 = vsub.f32 %v137_v32, %v143_v37 }
 0x259   :  { %145 = vst [vmem:[#allocation7] sm:$0xff] %v144_v38 }
 0x25a   :  { %306 = shalt.err (!%p303_p6)
}
 0x25b   :  { %s307_s15 = scalar_lea.hbm %s400_s3, 128 }
 0x25c   :  { %p308_p7 = scmp.ne.s32.totalorder %s400_s3, %s307_s15  ;;  %p311_p8 = scmp.lt.u32.totalorder %s307_s15, %s400_s3 }
 0x25e   :  { %p313_p9 = pnand %p311_p8, %p308_p7 }
 0x260   :  { %316 = shalt.err (!%p313_p9)
}
 0x261   :  { %155 = dma.vmem_to_hbm [thread:$0]  %s153_s12, 128, %s400_s3, [#allocation4]  }
 0x262   :  { %321 = dma.done.wait [#allocation4], 128  }
 0x263   :  { %322 = vsyncadd [#allocation4], 4294967168 }
 0x264   :  { %159 = vsyncpa [#allocation3], 1 }
 0x265   :  { %160 = vsyncpa [#allocation6], 1 }
 0x266   :  { %161 = vsyncpa [#allocation4], 1 }

// kernel: tpu_custom_call.1
= control target key start
LH: loop header
LB: loop body
LE: loop exit
PB: predicated region body
PF: predicated region fallthrough
CT: control target
= control target key end

     0   :  { %8 = vsyncpa [#allocation3], 0  ;;  %s397_s0 = inlined_call_operand.hbm [shape: f32[8,128], index: 0, kind: input, shape index: {}]   ;;  %s398_s1 = inlined_call_operand.hbm [shape: f32[128,128], index: 1, kind: input, shape index: {}]   ;;  %s399_s2 = inlined_call_operand.vmem [shape: f32[1,128], index: 2, kind: input, shape index: {}]   ;;  %s400_s3 = inlined_call_operand.hbm [shape: f32[8,128], index: 3, kind: output, shape index: {}]  }
   0x1   :  { %9 = vsyncpa [#allocation6], 0 }
   0x2   :  { %10 = vsyncpa [#allocation4], 0  ;;  %s323_s12 = smov [#allocation2]   ;;  %s324_s14 = smov [#allocation5]  }
   0x3   :  { %s17_s13 = sshll.u32 %s323_s12, 4  ;;  %s26_s15 = sshll.u32 %s324_s14, 4  ;;  %s18_s13 = int_to_ptr.vmem [resolvable:$true] %s17_s13  ;;  %s351_s15 = int_to_ptr.vmem [resolvable:$true] %s26_s15 }
   0x4   :  { %s251_s18 = scalar_lea.hbm %s397_s0, 128 }
   0x5   :  { %p252_p0 = scmp.ne.s32.totalorder %s397_s0, %s251_s18  ;;  %p255_p1 = scmp.lt.u32.totalorder %s251_s18, %s397_s0 }
   0x7   :  { %p257_p2 = pnand %p255_p1, %p252_p0 }
   0x9   :  { %260 = shalt.err (!%p257_p2)
}
   0xa   :  { %s261_s23 = scalar_lea.vmem %s18_s13, 128  ;;  %p266_p4 = scmp.lt.s32.totalorder %s18_s13, %s18_s13 }
   0xb   :  { %p262_p3 = scmp.ne.s32.totalorder %s18_s13, %s261_s23  ;;  %p267_p5 = scmp.lt.s32.totalorder %s261_s23, %s261_s23 }
   0xd   :  { %p268_p6 = por %p267_p5, %p266_p4 }
   0xf   :  { %p269_p7 = pnand %p268_p6, %p262_p3 }
  0x11   :  { %272 = shalt.err (!%p269_p7)
}
  0x12   :  { %20 = dma.hbm_to_vmem [thread:$0]  %s397_s0, 128, %s18_s13, [#allocation3]  }
  0x13   :  { %s273_s28 = scalar_lea.hbm %s398_s1, 2048 }
  0x14   :  { %p274_p8 = scmp.ne.s32.totalorder %s398_s1, %s273_s28  ;;  %p277_p9 = scmp.lt.u32.totalorder %s273_s28, %s398_s1 }
  0x16   :  { %p279_p10 = pnand %p277_p9, %p274_p8 }
  0x18   :  { %282 = shalt.err (!%p279_p10)
}
  0x19   :  { %s283_s6 = scalar_lea.vmem %s351_s15, 2048  ;;  %p288_p12 = scmp.lt.s32.totalorder %s351_s15, %s351_s15 }
  0x1a   :  { %p284_p11 = scmp.ne.s32.totalorder %s351_s15, %s283_s6  ;;  %p289_p13 = scmp.lt.s32.totalorder %s283_s6, %s283_s6 }
  0x1c   :  { %p290_p0 = por %p289_p13, %p288_p12 }
  0x1e   :  { %p291_p1 = pnand %p290_p0, %p284_p11 }
  0x20   :  { %294 = shalt.err (!%p291_p1)
}
  0x21   :  { %s325_s0 = smov 128   ;;  %s326_s7 = smov 8  }
  0x22   :  { %32 = dma.hbm_to_vmem [thread:$0]  %s398_s1, 2048, %s351_s15, [#allocation6], %s325_s0, %s325_s0, %s326_s7  }
  0x23   :  { %317 = dma.done.wait [#allocation3], 128  }
  0x24   :  { %318 = vsyncadd [#allocation3], 4294967168 }
  0x25   :  { %319 = dma.done.wait [#allocation6], 2048  }
  0x26   :  { %320 = vsyncadd [#allocation6], 4294965248  ;;  %v327_v0 = vmov 0.0|0.0   ;;  %vm328_vm0 = vmmov 0   ;;  %v329_v1 = vmov 0.0   ;;  %v42_v2 = vld [vmem:[#allocation5] sm:$0xff] }
  0x27   :  { %215 = vmatprep.subr.bf16.mxu0 %v327_v0  ;;  %212 = vmatprep.mubr.msk.f32.mxu0 %vm328_vm0, %v329_v1  ;;  %v43_v3 = vld [vmem:[#allocation5 + $0x8] sm:$0xff]  ;;  %v44_v4 = vld [vmem:[#allocation5 + $0x10] sm:$0xff]  ;;  %v45_v6 = vld [vmem:[#allocation5 + $0x18] sm:$0xff]  ;;  %s330_s11 = smov [#allocation7]  }
  0x28   :  { %v216_v5 = vpack.c.bf16 %v43_v3, %v42_v2  ;;  %v219_v7 = vpack.c.bf16 %v45_v6, %v44_v4  ;;  %v46_v8 = vld [vmem:[#allocation5 + $0x20] sm:$0xff]  ;;  %v47_v9 = vld [vmem:[#allocation5 + $0x28] sm:$0xff]  ;;  %v48_v11 = vld [vmem:[#allocation5 + $0x30] sm:$0xff]  ;;  %s152_s12 = sshll.u32 %s330_s11, 4  ;;  %s153_s12 = int_to_ptr.vmem [resolvable:$true] %s152_s12 }
  0x29   :  { %v222_v10 = vpack.c.bf16 %v47_v9, %v46_v8  ;;  %v49_v12 = vld [vmem:[#allocation5 + $0x38] sm:$0xff]  ;;  %v50_v14 = vld [vmem:[#allocation5 + $0x40] sm:$0xff]  ;;  %v51_v15 = vld [vmem:[#allocation5 + $0x48] sm:$0xff]  ;;  %p300_p3 = scmp.lt.s32.totalorder %s153_s12, %s153_s12 }
  0x2a   :  { %217 = vmatpush3.bf16.msra.mxu0 %v216_v5  ;;  %v225_v13 = vpack.c.bf16 %v49_v12, %v48_v11  ;;  %v228_v16 = vpack.c.bf16 %v51_v15, %v50_v14  ;;  %v52_v17 = vld [vmem:[#allocation5 + $0x50] sm:$0xff]  ;;  %v53_v18 = vld [vmem:[#allocation5 + $0x58] sm:$0xff]  ;;  %v54_v20 = vld [vmem:[#allocation5 + $0x60] sm:$0xff] }
  0x2b   :  { %218 = vmatprep.subr.bf16.mxu0 %v327_v0  ;;  %v231_v19 = vpack.c.bf16 %v53_v18, %v52_v17  ;;  %v55_v21 = vld [vmem:[#allocation5 + $0x68] sm:$0xff]  ;;  %v56_v23 = vld [vmem:[#allocation5 + $0x70] sm:$0xff]  ;;  %v57_v24 = vld [vmem:[#allocation5 + $0x78] sm:$0xff] }
  0x2c   :  { %v234_v22 = vpack.c.bf16 %v55_v21, %v54_v20  ;;  %v237_v25 = vpack.c.bf16 %v57_v24, %v56_v23  ;;  %v41_v26 = vld [vmem:[#allocation2] sm:$0xff] }
  0x2d   :  { %v162_v27 = vld [vmem:[%s399_s2] ss:$0 sm:$0xff]  ;;  %s295_s2 = scalar_lea.vmem %s153_s12, 128 }
  0x2e   :  { %220 = vmatpush3.bf16.msra.mxu0 %v219_v7  ;;  %p296_p2 = scmp.ne.s32.totalorder %s153_s12, %s295_s2  ;;  %p301_p4 = scmp.lt.s32.totalorder %s295_s2, %s295_s2 }
  0x2f   :  { %221 = vmatprep.subr.bf16.mxu0 %v327_v0 }
  0x30   :  { %p302_p5 = por %p301_p4, %p300_p3 }
  0x32   :  { %223 = vmatpush3.bf16.msra.mxu0 %v222_v10  ;;  %p303_p6 = pnand %p302_p5, %p296_p2 }
  0x33   :  { %224 = vmatprep.subr.bf16.mxu0 %v327_v0 }
  0x36   :  { %226 = vmatpush3.bf16.msra.mxu0 %v225_v13 }
  0x37   :  { %227 = vmatprep.subr.bf16.mxu0 %v327_v0 }
  0x3a   :  { %229 = vmatpush3.bf16.msra.mxu0 %v228_v16 }
  0x3b   :  { %230 = vmatprep.subr.bf16.mxu0 %v327_v0 }
  0x3e   :  { %232 = vmatpush3.bf16.msra.mxu0 %v231_v19 }
  0x3f   :  { %233 = vmatprep.subr.bf16.mxu0 %v327_v0 }
  0x42   :  { %235 = vmatpush3.bf16.msra.mxu0 %v234_v22 }
  0x43   :  { %236 = vmatprep.subr.bf16.mxu0 %v327_v0 }
  0x46   :  { %238 = vmatpush3.bf16.msra.mxu0 %v237_v25 }
  0x49   :  { %213 = vmatmul.mubr.f32.vlgmr.msra.gmra.mrb[0].mxu0 %v41_v26 }
 0x11c   :  { %v131_v28 = vpop.f32.mrb[0].mxu0 }
 0x11d   :  { %v132_v29 = vadd.f32 %v162_v27, %v131_v28  ;;  %v214_v30 = vpop.f32.mrb[1].mxu0 }
 0x11f   :  { %135 = vmax.xlane.f32.xlu0 %v132_v29 }
 0x1ac   :  { %v136_v31 = vpop.xlane.xlu0 %135 }
 0x1ad   :  { %v137_v32 = vsub.f32 %v132_v29, %v136_v31 }
 0x1af   :  { %v138_v33 = vmul.f32 1.442695, %v137_v32 }
 0x1b1   :  { %247 = vpow2.f32 %v138_v33 }
 0x1bb   :  { %v248_v34 = vpop.eup %247 }
 0x1bc   :  { %140 = vadd.xlane.f32.xlu0 %v248_v34 }
 0x249   :  { %v141_v35 = vpop.xlane.xlu0 %140 }
 0x24a   :  { %249 = vlog2.f32 %v141_v35 }
 0x254   :  { %v250_v36 = vpop.eup %249 }
 0x255   :  { %v143_v37 = vmul.f32 0.6931472, %v250_v36 }
 0x257   :  { %v144_v38 = vsub.f32 %v137_v32, %v143_v37 }
 0x259   :  { %145 = vst [vmem:[#allocation7] sm:$0xff] %v144_v38 }
 0x25a   :  { %306 = shalt.err (!%p303_p6)
}
 0x25b   :  { %s307_s15 = scalar_lea.hbm %s400_s3, 128 }
 0x25c   :  { %p308_p7 = scmp.ne.s32.totalorder %s400_s3, %s307_s15  ;;  %p311_p8 = scmp.lt.u32.totalorder %s307_s15, %s400_s3 }
 0x25e   :  { %p313_p9 = pnand %p311_p8, %p308_p7 }
 0x260   :  { %316 = shalt.err (!%p313_p9)
}
 0x261   :  { %155 = dma.vmem_to_hbm [thread:$0]  %s153_s12, 128, %s400_s3, [#allocation4]  }
 0x262   :  { %321 = dma.done.wait [#allocation4], 128  }
 0x263   :  { %322 = vsyncadd [#allocation4], 4294967168 }
 0x264   :  { %159 = vsyncpa [#allocation3], 1 }
 0x265   :  { %160 = vsyncpa [#allocation6], 1 }
 0x266   :  { %161 = vsyncpa [#allocation4], 1 }

</bundles_post_ra>
